<compile_context>
chip_gen: v6e
topology: v6e:2x2x1
jax: 0.10.0
libtpu: 0.0.40
codegen_flags: <defaults>
</compile_context>

<pallas_src>
import functools

import jax
import jax.numpy as jnp
from jax.experimental import pallas as pl
from jax.experimental.pallas import tpu as pltpu  # noqa: F401  (imported per convention)

_LANE = 128        # vreg lane width
_ROW_ALIGN = 16    # bf16 packs 2 rows/sublane -> keep weight row blocks 16-aligned


def _round_up(x: int, m: int) -> int:
    return (x + m - 1) // m * m


def _fused_mlp_kernel(x_ref, w_ref, b_ref, o_ref, *, dims_in, dims_out, row_offsets):
    """Fused MLP forward; one invocation, everything VMEM-resident.

    x_ref: [B, in_0]                bf16
    w_ref: [R, L] weight slab       bf16  (layer i in rows row_offsets[i]:+dims_in[i],
                                           lanes 0:dims_out[i], zero padded elsewhere)
    b_ref: [num_layers, L]          f32   (layer i bias in row i, lanes 0:dims_out[i])
    o_ref: [B, dims_out[-1]]        f32
    Intermediate activations never leave vregs/VMEM.
    """
    num_layers = len(dims_in)
    h = x_ref[...]                                                # [B, in_0] bf16
    for i in range(num_layers):                                   # unrolled at trace time
        r0 = row_offsets[i]
        w = w_ref[r0:r0 + dims_in[i], :]                          # static, sublane-aligned view
        z = jnp.dot(h, w, preferred_element_type=jnp.float32)     # MXU, f32 accumulator
        z = z + b_ref[i:i + 1, :]                                 # f32 epilogue (v5e-safe)
        if i < num_layers - 1:                                    # ReLU on all but last layer
            z = jnp.maximum(z, 0.0)
            h = z[:, :dims_out[i]].astype(jnp.bfloat16)           # trim pad lanes, bf16 for MXU
        else:
            o_ref[...] = z[:, :dims_out[i]].astype(o_ref.dtype)


def pack_params(params):
    """One-time repack of per-layer (W [in, out], b [out]) into two lane-dense slabs.

    Cuts operand DMAs from 1 + 2*num_layers down to 3 (x, weight slab, bias slab).
    Weights are stored bf16 (matmul operands); biases stay f32 (f32 epilogue).
    """
    dims_in = tuple(int(w.shape[0]) for w, _ in params)
    dims_out = tuple(int(w.shape[1]) for w, _ in params)

    slab_lanes = max(_round_up(d, _LANE) for d in dims_out)
    row_offsets, r = [], 0
    for d_in in dims_in:
        row_offsets.append(r)
        r += _round_up(d_in, _ROW_ALIGN)
    slab_rows = _round_up(max(r, _ROW_ALIGN), _ROW_ALIGN)

    w_slab = jnp.zeros((slab_rows, slab_lanes), jnp.bfloat16)
    b_slab = jnp.zeros((len(params), slab_lanes), jnp.float32)
    for i, (w, b) in enumerate(params):
        w_slab = w_slab.at[row_offsets[i]:row_offsets[i] + dims_in[i],
                           :dims_out[i]].set(w.astype(jnp.bfloat16))
        b_slab = b_slab.at[i, :dims_out[i]].set(b.astype(jnp.float32))

    return w_slab, b_slab, dims_in, dims_out, tuple(row_offsets)


def neural_net_forward(x, packed):
    """Single fused pallas_call for the whole MLP (matches NeuralNet.forward)."""
    w_slab, b_slab, dims_in, dims_out, row_offsets = packed
    B = x.shape[0]
    out_dim = dims_out[-1]

    x_bf16 = x.astype(jnp.bfloat16)   # bf16 matmul operands; f32 accumulate in-kernel

    kernel = functools.partial(_fused_mlp_kernel, dims_in=dims_in,
                               dims_out=dims_out, row_offsets=row_offsets)

    flops = 2 * B * sum(di * do for di, do in zip(dims_in, dims_out))
    bytes_accessed = (x_bf16.size * x_bf16.dtype.itemsize
                      + w_slab.size * w_slab.dtype.itemsize
                      + b_slab.size * b_slab.dtype.itemsize
                      + B * out_dim * x.dtype.itemsize)

    return pl.pallas_call(
        kernel,
        out_shape=jax.ShapeDtypeStruct((B, out_dim), x.dtype),
        # No grid / no BlockSpecs: each operand is one full VMEM-resident block;
        # no software-pipeline machinery for this tiny, fully-resident problem.
        cost_estimate=pl.CostEstimate(flops=flops, transcendentals=0,
                                      bytes_accessed=bytes_accessed),
    )(x_bf16, w_slab, b_slab)


def init_params(shape, key):
    """Deterministic init mimicking nn.Linear default: U(-1/sqrt(in), 1/sqrt(in))."""
    params = []
    for i in range(len(shape) - 1):
        fan_in, fan_out = shape[i], shape[i + 1]
        key, kw, kb = jax.random.split(key, 3)
        bound = 1.0 / jnp.sqrt(fan_in)
        # stored as [in, out] (kernel layout); PyTorch stores [out, in]
        w = jax.random.uniform(kw, (fan_in, fan_out), jnp.float32, -bound, bound)
        b = jax.random.uniform(kb, (fan_out,), jnp.float32, -bound, bound)
        params.append((w, b))
    return params


if __name__ == "__main__":
    key = jax.random.PRNGKey(0)

    # Small MLP: 32 -> 64 -> 48 -> 16, batch of 8.
    layer_shape = (32, 64, 48, 16)
    batch = 8

    key, kx = jax.random.split(key)
    x = jax.random.normal(kx, (batch, layer_shape[0]), jnp.float32)

    params = init_params(layer_shape, key)
    packed = pack_params(params)          # one-time packing (amortized in a real loop)

    out = neural_net_forward(x, packed)
    out = jax.block_until_ready(out)

    assert out.shape == (batch, layer_shape[-1]), out.shape
    assert out.dtype == jnp.float32, out.dtype

    # Sanity check against a pure-JAX f32 reference of the same forward pass.
    # Tolerance loosened because the kernel uses bf16 matmul operands (f32 accumulation).
    ref = x
    for idx, (w, b) in enumerate(params):
        ref = ref @ w + b
        if idx < len(params) - 1:
            ref = jnp.maximum(ref, 0.0)
    max_err = jnp.max(jnp.abs(out - ref))
    assert jnp.allclose(out, ref, atol=5e-2, rtol=5e-2), max_err

    print("KERNEL_OK")
</pallas_src>

<mosaic_0001>
module attributes {stable_mosaic.version = 11 : i64} {
  func.func @_fused_mlp_kernel(%arg0: memref<8x32xbf16, #tpu.memory_space<vmem>>, %arg1: memref<144x128xbf16, #tpu.memory_space<vmem>>, %arg2: memref<3x128xf32, #tpu.memory_space<vmem>>, %arg3: memref<8x16xf32, #tpu.memory_space<vmem>>) attributes {dimension_semantics = [], scalar_prefetch = 0 : i64, scratch_operands = 0 : i64, tpu.core_type = #tpu.core_type<tc>} {
    %c0 = arith.constant 0 : index
    %c0_0 = arith.constant 0 : index
    %0 = vector.load %arg0[%c0, %c0_0] : memref<8x32xbf16, #tpu.memory_space<vmem>>, vector<8x32xbf16>
    %c0_1 = arith.constant 0 : index
    %c0_2 = arith.constant 0 : index
    %1 = vector.load %arg1[%c0_1, %c0_2] : memref<144x128xbf16, #tpu.memory_space<vmem>>, vector<32x128xbf16>
    %cst = arith.constant dense<0.000000e+00> : vector<8x128xf32>
    %2 = tpu.matmul %0, %1, %cst {dimension_numbers = #tpu.dot_dimension_numbers<[1], [0], [0], [1], [0, 0, 1, 1], [], []>} : vector<8x32xbf16>, vector<32x128xbf16>, vector<8x128xf32> -> vector<8x128xf32>
    %c0_3 = arith.constant 0 : index
    %c0_4 = arith.constant 0 : index
    %3 = vector.load %arg2[%c0_3, %c0_4] : memref<3x128xf32, #tpu.memory_space<vmem>>, vector<1x128xf32>
    %4 = vector.broadcast %3 : vector<1x128xf32> to vector<8x128xf32>
    %5 = arith.addf %2, %4 : vector<8x128xf32>
    %cst_5 = arith.constant 0.000000e+00 : f32
    %6 = vector.broadcast %cst_5 : f32 to vector<8x128xf32>
    %7 = arith.maximumf %5, %6 : vector<8x128xf32>
    %8 = vector.extract_strided_slice %7 {offsets = [0, 0], sizes = [8, 64], strides = [1, 1]} : vector<8x128xf32> to vector<8x64xf32>
    %9 = arith.truncf %8 : vector<8x64xf32> to vector<8x64xbf16>
    %c32 = arith.constant 32 : index
    %c0_6 = arith.constant 0 : index
    %10 = vector.load %arg1[%c32, %c0_6] : memref<144x128xbf16, #tpu.memory_space<vmem>>, vector<64x128xbf16>
    %cst_7 = arith.constant dense<0.000000e+00> : vector<8x128xf32>
    %11 = tpu.matmul %9, %10, %cst_7 {dimension_numbers = #tpu.dot_dimension_numbers<[1], [0], [0], [1], [0, 0, 1, 1], [], []>} : vector<8x64xbf16>, vector<64x128xbf16>, vector<8x128xf32> -> vector<8x128xf32>
    %c1 = arith.constant 1 : index
    %c0_8 = arith.constant 0 : index
    %12 = vector.load %arg2[%c1, %c0_8] : memref<3x128xf32, #tpu.memory_space<vmem>>, vector<1x128xf32>
    %13 = vector.broadcast %12 : vector<1x128xf32> to vector<8x128xf32>
    %14 = arith.addf %11, %13 : vector<8x128xf32>
    %cst_9 = arith.constant 0.000000e+00 : f32
    %15 = vector.broadcast %cst_9 : f32 to vector<8x128xf32>
    %16 = arith.maximumf %14, %15 : vector<8x128xf32>
    %17 = vector.extract_strided_slice %16 {offsets = [0, 0], sizes = [8, 48], strides = [1, 1]} : vector<8x128xf32> to vector<8x48xf32>
    %18 = arith.truncf %17 : vector<8x48xf32> to vector<8x48xbf16>
    %c96 = arith.constant 96 : index
    %c0_10 = arith.constant 0 : index
    %19 = vector.load %arg1[%c96, %c0_10] : memref<144x128xbf16, #tpu.memory_space<vmem>>, vector<48x128xbf16>
    %cst_11 = arith.constant dense<0.000000e+00> : vector<8x128xf32>
    %20 = tpu.matmul %18, %19, %cst_11 {dimension_numbers = #tpu.dot_dimension_numbers<[1], [0], [0], [1], [0, 0, 1, 1], [], []>} : vector<8x48xbf16>, vector<48x128xbf16>, vector<8x128xf32> -> vector<8x128xf32>
    %c2 = arith.constant 2 : index
    %c0_12 = arith.constant 0 : index
    %21 = vector.load %arg2[%c2, %c0_12] : memref<3x128xf32, #tpu.memory_space<vmem>>, vector<1x128xf32>
    %22 = vector.broadcast %21 : vector<1x128xf32> to vector<8x128xf32>
    %23 = arith.addf %20, %22 : vector<8x128xf32>
    %24 = vector.extract_strided_slice %23 {offsets = [0, 0], sizes = [8, 16], strides = [1, 1]} : vector<8x128xf32> to vector<8x16xf32>
    %c0_13 = arith.constant 0 : index
    %c0_14 = arith.constant 0 : index
    %25 = vector.load %arg3[%c0_13, %c0_14] : memref<8x16xf32, #tpu.memory_space<vmem>>, vector<8x16xf32>
    tpu.vector_store %arg3[%c0_13, %c0_14], %24 {strides = array<i32>} : memref<8x16xf32, #tpu.memory_space<vmem>>, vector<8x16xf32>,
    return
  }
}

</mosaic_0001>

<bundles_post_ra>
// kernel: tpu_custom_call.1
= control target key start
LH: loop header
LB: loop body
LE: loop exit
PB: predicated region body
PF: predicated region fallthrough
CT: control target
= control target key end

     0   :  { %8 = vsyncpa [#allocation3], 0  ;;  %s498_s0 = inlined_call_operand.hbm [shape: bf16[8,32], index: 0, kind: input, shape index: {}]   ;;  %s499_s1 = inlined_call_operand.hbm [shape: bf16[144,128], index: 1, kind: input, shape index: {}]   ;;  %s500_s2 = inlined_call_operand.hbm [shape: f32[3,128], index: 2, kind: input, shape index: {}]   ;;  %s501_s3 = inlined_call_operand.hbm [shape: f32[8,16], index: 3, kind: output, shape index: {}]  }
   0x1   :  { %9 = vsyncpa [#allocation6], 0 }
   0x2   :  { %10 = vsyncpa [#allocation4], 0  ;;  %s455_s12 = smov [#allocation5]  }
   0x3   :  { %s26_s13 = sshll.u32 %s455_s12, 4  ;;  %s27_s13 = int_to_ptr.vmem [resolvable:$true] %s26_s13 }
   0x4   :  { %s377_s14 = scalar_lea.vmem %s27_s13, 1152  ;;  %p382_p1 = scmp.lt.s32.totalorder %s27_s13, %s27_s13 }
   0x5   :  { %p378_p0 = scmp.ne.s32.totalorder %s27_s13, %s377_s14  ;;  %p383_p2 = scmp.lt.s32.totalorder %s377_s14, %s377_s14 }
   0x7   :  { %p384_p3 = por %p383_p2, %p382_p1 }
   0x9   :  { %p385_p4 = pnand %p384_p3, %p378_p0 }
   0xb   :  { %388 = shalt.err (!%p385_p4)
}
   0xc   :  { %s456_s15 = smov 64   ;;  %s457_s16 = smov 4  }
   0xd   :  { %32 = dma.hbm_to_vmem [thread:$0]  %s499_s1, 1152, %s27_s13, [#allocation6], %s456_s15, %s456_s15, %s457_s16  }
   0xe   :  { %s458_s19 = smov [#allocation2]   ;;  %s459_s21 = smov [#allocation7]  }
   0xf   :  { %s17_s20 = sshll.u32 %s458_s19, 4  ;;  %s39_s22 = sshll.u32 %s459_s21, 4  ;;  %s18_s20 = int_to_ptr.vmem [resolvable:$true] %s17_s20  ;;  %s40_s22 = int_to_ptr.vmem [resolvable:$true] %s39_s22 }
  0x10   :  { %s397_s23 = scalar_lea.vmem %s18_s20, 64  ;;  %p402_p6 = scmp.lt.s32.totalorder %s18_s20, %s18_s20 }
  0x11   :  { %p398_p5 = scmp.ne.s32.totalorder %s18_s20, %s397_s23  ;;  %p403_p7 = scmp.lt.s32.totalorder %s397_s23, %s397_s23 }
  0x13   :  { %p404_p8 = por %p403_p7, %p402_p6 }
  0x15   :  { %p405_p9 = pnand %p404_p8, %p398_p5 }
  0x17   :  { %408 = shalt.err (!%p405_p9)
}
  0x18   :  { %20 = dma.hbm_to_vmem [thread:$0]  %s498_s0, 64, %s18_s20, [#allocation3]  }
  0x19   :  { %s417_s26 = scalar_lea.vmem %s40_s22, 64  ;;  %p422_p11 = scmp.lt.s32.totalorder %s40_s22, %s40_s22 }
  0x1a   :  { %p418_p10 = scmp.ne.s32.totalorder %s40_s22, %s417_s26  ;;  %p423_p12 = scmp.lt.s32.totalorder %s417_s26, %s417_s26 }
  0x1c   :  { %p424_p13 = por %p423_p12, %p422_p11 }
  0x1e   :  { %p425_p0 = pnand %p424_p13, %p418_p10 }
  0x20   :  { %428 = shalt.err (!%p425_p0)
}
  0x21   :  { %42 = dma.hbm_to_vmem [thread:$0]  %s500_s2, 64, %s40_s22, [#allocation6]  }
  0x22   :  { %449 = dma.done.wait [#allocation3], 64  }
  0x23   :  { %450 = vsyncadd [#allocation3], 4294967232 }
  0x24   :  { %451 = dma.done.wait [#allocation6], 1216  }
  0x25   :  { %452 = vsyncadd [#allocation6], 4294966080  ;;  %v460_v0 = vmov 0.0   ;;  %vm461_vm0 = vmmov 0   ;;  %v360_v1 = vld [vmem:[#allocation5 + $0x8] sm:$0xff]   ;;  %v361_v2 = vld [vmem:[#allocation5] sm:$0xff]  }
  0x26   :  { %322 = vmatprep.subr.bf16.mxu0 %v460_v0  ;;  %326 = vmatprep.mubr.msk.bf16.mxu0 %vm461_vm0, %v460_v0  ;;  %v362_v3 = vld [vmem:[#allocation5 + $0x28] sm:$0xff]   ;;  %v53_v4 = vld [vmem:[#allocation2] sm:$0xf]  ;;  %vm75_vm1 = vcmask 261120   ;;  %v363_v5 = vld [vmem:[#allocation5 + $0x20] sm:$0xff]   ;;  %vm158_vm2 = vcmask 523264  }
  0x27   :  { %330 = vmatprep.subr.bf16.mxu1 %v460_v0  ;;  %338 = vmatprep.mubr.msk.bf16.mxu1 %vm461_vm0, %v460_v0  ;;  %v364_v6 = vld [vmem:[#allocation5 + $0x18] sm:$0xff]   ;;  %v365_v7 = vld [vmem:[#allocation5 + $0x10] sm:$0xff]   ;;  %v366_v8 = vld [vmem:[#allocation5 + $0x40] sm:$0xff]   ;;  %vm233_vm3 = vcmask 392192   ;;  %s462_s0 = smov [#allocation8]   ;;  %vm277_vm4 = vcmask 130048  }
  0x28   :  { %323 = vmatpush3.bf16.msra.mxu0 %v360_v1  ;;  %331 = vmatpush3.bf16.msra.mxu1 %v362_v3  ;;  %v295_v9 = vld [vmem:[#allocation7] ss:$0 sm:$0xff]  ;;  %v367_v17 = vld [vmem:[#allocation5 + $0x38] sm:$0xff]   ;;  %v368_v18 = vld [vmem:[#allocation5 + $0x30] sm:$0xff]   ;;  %s285_s2 = sshll.u32 %s462_s0, 4  ;;  %s286_s2 = int_to_ptr.vmem [resolvable:$true] %s285_s2 }
  0x29   :  { %324 = vmatprep.subr.bf16.mxu0 %v460_v0  ;;  %332 = vmatprep.subr.bf16.mxu1 %v460_v0  ;;  %v299_v19 = vld [vmem:[#allocation7 + $0x1] ss:$0 sm:$0xff]  ;;  %v305_v27 = vld [vmem:[#allocation7 + $0x2] ss:$0 sm:$0xff]  ;;  %s429_s28 = scalar_lea.vmem %s286_s2, 128  ;;  %p434_p2 = scmp.lt.s32.totalorder %s286_s2, %s286_s2 }
  0x2a   :  { %p430_p1 = scmp.ne.s32.totalorder %s286_s2, %s429_s28  ;;  %p435_p3 = scmp.lt.s32.totalorder %s429_s28, %s429_s28 }
  0x2c   :  { %325 = vmatpush3.bf16.msra.mxu0 %v361_v2  ;;  %333 = vmatpush3.bf16.msra.mxu1 %v363_v5  ;;  %p436_p4 = por %p435_p3, %p434_p2 }
  0x2d   :  { %342 = vmatprep.subr.bf16.mxu0 %v460_v0  ;;  %334 = vmatprep.subr.bf16.mxu1 %v460_v0 }
  0x2e   :  { %p437_p5 = pnand %p436_p4, %p430_p1 }
  0x2f   :  { %327 = vmatmul.mubr.msk.bf16.vlgmr.msra.gmra.mxu0 %vm75_vm1, %v53_v4 }
  0x30   :  { %348 = vmatprep.mubr.msk.bf16.mxu0 %vm461_vm0, %v460_v0  ;;  %335 = vmatpush3.bf16.msra.mxu1 %v364_v6 }
  0x31   :  { %336 = vmatprep.subr.bf16.mxu1 %v460_v0  ;;  %343 = vmatpush3.bf16.msra.mxu0 %v366_v8 }
  0x32   :  { %344 = vmatprep.subr.bf16.mxu0 %v460_v0 }
  0x34   :  { %337 = vmatpush3.bf16.msra.mxu1 %v365_v7 }
  0x35   :  { %345 = vmatpush3.bf16.msra.mxu0 %v367_v17 }
  0x36   :  { %346 = vmatprep.subr.bf16.mxu0 %v460_v0 }
  0x39   :  { %347 = vmatpush3.bf16.msra.mxu0 %v368_v18 }
  0xef   :  { %v113_v10 = vpop.f32.mrf.mxu0 }
  0xf0   :  { %v114_v11 = vadd.f32 %v295_v9, %v113_v10 }
  0xf1   :  { %v328_v12 = vpop.f32.mrf.mxu0 }
  0xf2   :  { %v119_v13 = vmax.f32 %v114_v11, 0.0 }
  0xf3   :  { %v116_v14 = vpop.f32.mrf.mxu0 }
  0xf4   :  { %v120_v15 = vpack.c.bf16 %v119_v13, %v119_v13 }
  0xf5   :  { %v329_v16 = vpop.f32.mrf.mxu0 }
  0xf6   :  { %339 = vmatmul.mubr.msk.bf16.vlgmr.msra.gmra.mxu1 %vm158_vm2, %v120_v15 }
 0x1b6   :  { %v196_v20 = vpop.f32.mrf.mxu1 }
 0x1b7   :  { %v197_v21 = vadd.f32 %v299_v19, %v196_v20 }
 0x1b8   :  { %v340_v22 = vpop.f32.mrf.mxu1 }
 0x1b9   :  { %v202_v23 = vmax.f32 %v197_v21, 0.0 }
 0x1ba   :  { %v199_v24 = vpop.f32.mrf.mxu1 }
 0x1bb   :  { %v203_v25 = vpack.c.bf16 %v202_v23, %v202_v23 }
 0x1bc   :  { %v341_v26 = vpop.f32.mrf.mxu1 }
 0x1bd   :  { %349 = vmatmul.mubr.msk.bf16.vlgmr.msra.gmra.mxu0 %vm233_vm3, %v203_v25 }
 0x27d   :  { %v271_v28 = vpop.f32.mrf.mxu0 }
 0x27e   :  { %v272_v29 = vadd.f32 %v305_v27, %v271_v28 }
 0x27f   :  { %v350_v30 = vpop.f32.mrf.mxu0 }
 0x280   :  { %278 = vst.msk [vmem:[#allocation8] sm:$0xff] %vm277_vm4, %v272_v29 }
 0x281   :  { %v274_v31 = vpop.f32.mrf.mxu0 }
 0x282   :  { %440 = shalt.err (!%p437_p5)
}
 0x283   :  { %288 = dma.vmem_to_hbm [thread:$0]  %s286_s2, 128, %s501_s3, [#allocation4]   ;;  %v351_v32 = vpop.f32.mrf.mxu0 }
 0x284   :  { %453 = dma.done.wait [#allocation4], 128  }
 0x285   :  { %454 = vsyncadd [#allocation4], 4294967168 }
 0x286   :  { %292 = vsyncpa [#allocation3], 1 }
 0x287   :  { %293 = vsyncpa [#allocation6], 1 }
 0x288   :  { %294 = vsyncpa [#allocation4], 1 }

</bundles_post_ra>
